<compile_context>
chip_gen: v7x
topology: tpu7x:2x2x1
jax: 0.10.0
libtpu: 0.0.40
codegen_flags: <defaults>
</compile_context>

<pallas_src>
import functools

import jax
import jax.numpy as jnp
import numpy as np
from jax.experimental import pallas as pl
from jax.experimental.pallas import tpu as pltpu


# ---------------------------------------------------------------------------
# Pallas kernel: fully fused (input proj + LSTM recurrence + decoder linear),
# single invocation, all operands resident in VMEM.
# ---------------------------------------------------------------------------
def fused_lstm_kernel(x_ref, h0_ref, c0_ref, wih_ref, whh_ref, b_ref,
                      wdec_ref, bdec_ref,
                      dec_ref, hn_ref, cn_ref, *, seq_len, batch, hidden):
    H = hidden
    B = batch

    # (1) Hoisted input projection: one well-shaped matmul for all timesteps.
    #     x_ref: (T*B, D_in), wih_ref: (D_in, 4H)  ->  (T*B, 4H)
    gates_x = (jnp.dot(x_ref[...], wih_ref[...],
                       preferred_element_type=jnp.float32)
               + b_ref[...])

    whh = whh_ref[...]          # (H, 4H), kept in vregs across the recurrence
    h = h0_ref[...]             # (B, H)  f32 state
    c = c0_ref[...]             # (B, H)  f32 state

    # (2) Serial recurrence. T is small & static -> fully unrolled with static
    #     slices; only the (B, H) @ (H, 4H) matmul remains on the critical
    #     path per step.
    hs = []
    for t in range(seq_len):
        gates = (gates_x[t * B:(t + 1) * B, :]
                 + jnp.dot(h, whh, preferred_element_type=jnp.float32))
        # NOTE: H=64 gate slices are sub-vreg (lane offsets 0/64/128/192);
        # acceptable at this size -- padding H to 128 or a roll-based masked
        # activation scheme is only worth it for much larger B/H.
        i_g = jax.nn.sigmoid(gates[:, 0 * H:1 * H])
        f_g = jax.nn.sigmoid(gates[:, 1 * H:2 * H])
        g_g = jnp.tanh(gates[:, 2 * H:3 * H])
        o_g = jax.nn.sigmoid(gates[:, 3 * H:4 * H])
        c = f_g * c + i_g * g_g
        h = o_g * jnp.tanh(c)
        hs.append(h)

    hn_ref[...] = h
    cn_ref[...] = c

    # (3) Hoisted decoder: one (T*B, H) @ (H, C_pad) matmul; output lane dim is
    #     padded to a multiple of 128 so the single store is lane-dense.
    h_all = jnp.concatenate(hs, axis=0)                     # (T*B, H)
    dec_ref[...] = (jnp.dot(h_all, wdec_ref[...],
                            preferred_element_type=jnp.float32)
                    + bdec_ref[...])


def lstm_forward_pallas(x, h0, c0, w_ih, w_hh, b_ih, b_hh, w_dec, b_dec):
    """x: (T, B, D_in) f32.  h0/c0: (B, H).  Weights in PyTorch layout:
       w_ih (4H, D_in), w_hh (4H, H), w_dec (C, H)."""
    T, B, D_in = x.shape
    H = h0.shape[-1]
    C = w_dec.shape[0]
    C_pad = ((C + 127) // 128) * 128        # lane-dense decoder output

    x2 = x.reshape(T * B, D_in).astype(jnp.float32)
    wih_t = jnp.transpose(w_ih).astype(jnp.float32)          # (D_in, 4H)
    whh_t = jnp.transpose(w_hh).astype(jnp.float32)          # (H, 4H)
    bias = (b_ih + b_hh).reshape(1, 4 * H).astype(jnp.float32)
    wdec_t = jnp.zeros((H, C_pad), jnp.float32).at[:, :C].set(
        jnp.transpose(w_dec).astype(jnp.float32))            # (H, C_pad)
    bdec = jnp.zeros((1, C_pad), jnp.float32).at[:, :C].set(
        b_dec.astype(jnp.float32))                           # (1, C_pad)

    kernel = functools.partial(fused_lstm_kernel,
                               seq_len=T, batch=B, hidden=H)

    dec_pad, hn, cn = pl.pallas_call(
        kernel,
        out_shape=(
            jax.ShapeDtypeStruct((T * B, C_pad), jnp.float32),  # decoder out
            jax.ShapeDtypeStruct((B, H), jnp.float32),          # h_n
            jax.ShapeDtypeStruct((B, H), jnp.float32),          # c_n
        ),
        grid_spec=pltpu.PrefetchScalarGridSpec(
            num_scalar_prefetch=0,
            grid=(1,),                      # single invocation, all-resident
            in_specs=[
                pl.BlockSpec((T * B, D_in), lambda i: (0, 0)),   # x (flat T*B)
                pl.BlockSpec((B, H), lambda i: (0, 0)),          # h0
                pl.BlockSpec((B, H), lambda i: (0, 0)),          # c0
                pl.BlockSpec((D_in, 4 * H), lambda i: (0, 0)),   # W_ih^T
                pl.BlockSpec((H, 4 * H), lambda i: (0, 0)),      # W_hh^T
                pl.BlockSpec((1, 4 * H), lambda i: (0, 0)),      # bias
                pl.BlockSpec((H, C_pad), lambda i: (0, 0)),      # W_dec^T pad
                pl.BlockSpec((1, C_pad), lambda i: (0, 0)),      # b_dec pad
            ],
            out_specs=[
                pl.BlockSpec((T * B, C_pad), lambda i: (0, 0)),  # decoded
                pl.BlockSpec((B, H), lambda i: (0, 0)),          # h_n
                pl.BlockSpec((B, H), lambda i: (0, 0)),          # c_n
            ],
        ),
        compiler_params=pltpu.CompilerParams(
            dimension_semantics=("arbitrary",)),
    )(x2, h0.astype(jnp.float32), c0.astype(jnp.float32),
      wih_t, whh_t, bias, wdec_t, bdec)

    dec = dec_pad[:, :C].reshape(T, B, C)
    return dec, (hn[None], cn[None])   # hidden in (n_layers=1, B, H) layout


# ---------------------------------------------------------------------------
# Pure-JAX reference (for a correctness sanity check)
# ---------------------------------------------------------------------------
def lstm_forward_ref(x, h0, c0, w_ih, w_hh, b_ih, b_hh, w_dec, b_dec):
    H = h0.shape[-1]

    def step(carry, x_t):
        h, c = carry
        gates = x_t @ w_ih.T + b_ih + h @ w_hh.T + b_hh
        i = jax.nn.sigmoid(gates[:, 0 * H:1 * H])
        f = jax.nn.sigmoid(gates[:, 1 * H:2 * H])
        g = jnp.tanh(gates[:, 2 * H:3 * H])
        o = jax.nn.sigmoid(gates[:, 3 * H:4 * H])
        c_new = f * c + i * g
        h_new = o * jnp.tanh(c_new)
        return (h_new, c_new), h_new

    (hn, cn), hs = jax.lax.scan(step, (h0, c0), x)
    dec = hs @ w_dec.T + b_dec
    return dec, (hn[None], cn[None])


# ---------------------------------------------------------------------------
# Glue matching the PyTorch forward (embeddings + feature concat)
# ---------------------------------------------------------------------------
def build_lstm_input(data, tokens, spk_emb, da_emb, lvl_emb, word_emb):
    """data: (T, B, 5) int32  (speaker, DA, level, utt_length, csv_row_idx)
       tokens: (T, B, W) int32 word indices per utterance.
    Mirrors the torch.cat of embeddings + length + summed word vectors."""
    spk = spk_emb[data[:, :, 0]]                    # (T, B, 1)
    da = da_emb[data[:, :, 1]]                      # (T, B, 7)
    lvl = lvl_emb[data[:, :, 2]]                    # (T, B, 2)
    length = data[:, :, 3:4].astype(jnp.float32)    # (T, B, 1)
    # TODO(synk): CSV row lookup + JSON word->index tokenization has no Pallas
    # equivalent (file I/O / string ops); synthetic token indices stand in.
    utt = jnp.sum(word_emb[tokens], axis=2)         # (T, B, word_dim)
    return jnp.concatenate([spk, da, lvl, length, utt], axis=-1)


if __name__ == "__main__":
    # Module-implied sizes (small word-embedding dim chosen for the synthetic
    # weights_matrix).
    T, B = 8, 2                      # seq_len, batch (time-major like nn.LSTM)
    input_dims = [2, 13, 4]
    emb_dims = [1, 7, 2]
    vocab, word_dim = 100, 16
    H, C = 64, 13
    W_words = 5
    D_in = emb_dims[0] + emb_dims[1] + emb_dims[2] + word_dim + 1   # 27

    key = jax.random.PRNGKey(0)
    ks = jax.random.split(key, 12)

    # Deterministic "parameters".
    spk_emb = jax.random.normal(ks[0], (input_dims[0], emb_dims[0]), jnp.float32)
    da_emb = jax.random.normal(ks[1], (input_dims[1], emb_dims[1]), jnp.float32)
    lvl_emb = jax.random.normal(ks[2], (input_dims[2], emb_dims[2]), jnp.float32)
    word_emb = jax.random.normal(ks[3], (vocab, word_dim), jnp.float32) * 0.3

    s = 0.1
    w_ih = jax.random.normal(ks[4], (4 * H, D_in), jnp.float32) * s
    w_hh = jax.random.normal(ks[5], (4 * H, H), jnp.float32) * s
    b_ih = jax.random.normal(ks[6], (4 * H,), jnp.float32) * s
    b_hh = jax.random.normal(ks[7], (4 * H,), jnp.float32) * s
    w_dec = jax.random.normal(ks[8], (C, H), jnp.float32) * s
    b_dec = jax.random.normal(ks[9], (C,), jnp.float32) * s

    # Deterministic inputs.
    data = jnp.stack([
        jax.random.randint(jax.random.fold_in(ks[10], 0), (T, B), 0, input_dims[0]),
        jax.random.randint(jax.random.fold_in(ks[10], 1), (T, B), 0, input_dims[1]),
        jax.random.randint(jax.random.fold_in(ks[10], 2), (T, B), 0, input_dims[2]),
        jax.random.randint(jax.random.fold_in(ks[10], 3), (T, B), 1, 20),
        jax.random.randint(jax.random.fold_in(ks[10], 4), (T, B), 0, 1000),
    ], axis=-1).astype(jnp.int32)                        # (T, B, 5)
    tokens = jax.random.randint(ks[11], (T, B, W_words), 0, vocab).astype(jnp.int32)

    h0 = jnp.zeros((B, H), jnp.float32)
    c0 = jnp.zeros((B, H), jnp.float32)

    x = build_lstm_input(data, tokens, spk_emb, da_emb, lvl_emb, word_emb)

    dec, (hn, cn) = lstm_forward_pallas(x, h0, c0, w_ih, w_hh, b_ih, b_hh,
                                        w_dec, b_dec)
    jax.block_until_ready((dec, hn, cn))

    dec_r, (hn_r, cn_r) = lstm_forward_ref(x, h0, c0, w_ih, w_hh, b_ih, b_hh,
                                           w_dec, b_dec)
    np.testing.assert_allclose(np.asarray(dec), np.asarray(dec_r),
                               rtol=1e-5, atol=1e-5)
    np.testing.assert_allclose(np.asarray(hn), np.asarray(hn_r),
                               rtol=1e-5, atol=1e-5)
    np.testing.assert_allclose(np.asarray(cn), np.asarray(cn_r),
                               rtol=1e-5, atol=1e-5)

    print("KERNEL_OK")
</pallas_src>

<mosaic_0001>
module attributes {stable_mosaic.version = 11 : i64} {
  func.func @fused_lstm_kernel(%arg0: i32, %arg1: memref<16x27xf32, #tpu.memory_space<vmem>>, %arg2: memref<2x64xf32, #tpu.memory_space<vmem>>, %arg3: memref<2x64xf32, #tpu.memory_space<vmem>>, %arg4: memref<27x256xf32, #tpu.memory_space<vmem>>, %arg5: memref<64x256xf32, #tpu.memory_space<vmem>>, %arg6: memref<1x256xf32, #tpu.memory_space<vmem>>, %arg7: memref<64x128xf32, #tpu.memory_space<vmem>>, %arg8: memref<1x128xf32, #tpu.memory_space<vmem>>, %arg9: memref<16x128xf32, #tpu.memory_space<vmem>>, %arg10: memref<2x64xf32, #tpu.memory_space<vmem>>, %arg11: memref<2x64xf32, #tpu.memory_space<vmem>>) attributes {dimension_semantics = [#tpu.dimension_semantics<arbitrary>], iteration_bounds = array<i64: 1>, scalar_prefetch = 0 : i64, scratch_operands = 0 : i64, tpu.core_type = #tpu.core_type<tc>, window_params = [{pipeline_mode = #tpu.pipeline_mode<synchronous>, transform_indices = @transform_0, window_bounds = array<i64: 16, 27>}, {pipeline_mode = #tpu.pipeline_mode<synchronous>, transform_indices = @transform_1, window_bounds = array<i64: 2, 64>}, {pipeline_mode = #tpu.pipeline_mode<synchronous>, transform_indices = @transform_2, window_bounds = array<i64: 2, 64>}, {pipeline_mode = #tpu.pipeline_mode<synchronous>, transform_indices = @transform_3, window_bounds = array<i64: 27, 256>}, {pipeline_mode = #tpu.pipeline_mode<synchronous>, transform_indices = @transform_4, window_bounds = array<i64: 64, 256>}, {pipeline_mode = #tpu.pipeline_mode<synchronous>, transform_indices = @transform_5, window_bounds = array<i64: 1, 256>}, {pipeline_mode = #tpu.pipeline_mode<synchronous>, transform_indices = @transform_6, window_bounds = array<i64: 64, 128>}, {pipeline_mode = #tpu.pipeline_mode<synchronous>, transform_indices = @transform_7, window_bounds = array<i64: 1, 128>}, {pipeline_mode = #tpu.pipeline_mode<synchronous>, transform_indices = @transform_8, window_bounds = array<i64: 16, 128>}, {pipeline_mode = #tpu.pipeline_mode<synchronous>, transform_indices = @transform_9, window_bounds = array<i64: 2, 64>}, {pipeline_mode = #tpu.pipeline_mode<synchronous>, transform_indices = @transform_10, window_bounds = array<i64: 2, 64>}]} {
    %c0 = arith.constant 0 : index
    %c0_0 = arith.constant 0 : index
    %0 = vector.load %arg1[%c0, %c0_0] : memref<16x27xf32, #tpu.memory_space<vmem>>, vector<16x27xf32>
    %c0_1 = arith.constant 0 : index
    %c0_2 = arith.constant 0 : index
    %1 = vector.load %arg4[%c0_1, %c0_2] : memref<27x256xf32, #tpu.memory_space<vmem>>, vector<27x256xf32>
    %cst = arith.constant dense<0.000000e+00> : vector<16x256xf32>
    %2 = tpu.matmul %0, %1, %cst {dimension_numbers = #tpu.dot_dimension_numbers<[1], [0], [0], [1], [0, 0, 1, 1], [], []>} : vector<16x27xf32>, vector<27x256xf32>, vector<16x256xf32> -> vector<16x256xf32>
    %c0_3 = arith.constant 0 : index
    %c0_4 = arith.constant 0 : index
    %3 = vector.load %arg6[%c0_3, %c0_4] : memref<1x256xf32, #tpu.memory_space<vmem>>, vector<1x256xf32>
    %4 = vector.broadcast %3 : vector<1x256xf32> to vector<16x256xf32>
    %5 = arith.addf %2, %4 : vector<16x256xf32>
    %c0_5 = arith.constant 0 : index
    %c0_6 = arith.constant 0 : index
    %6 = vector.load %arg5[%c0_5, %c0_6] : memref<64x256xf32, #tpu.memory_space<vmem>>, vector<64x256xf32>
    %c0_7 = arith.constant 0 : index
    %c0_8 = arith.constant 0 : index
    %7 = vector.load %arg2[%c0_7, %c0_8] : memref<2x64xf32, #tpu.memory_space<vmem>>, vector<2x64xf32>
    %c0_9 = arith.constant 0 : index
    %c0_10 = arith.constant 0 : index
    %8 = vector.load %arg3[%c0_9, %c0_10] : memref<2x64xf32, #tpu.memory_space<vmem>>, vector<2x64xf32>
    %9 = vector.extract_strided_slice %5 {offsets = [0, 0], sizes = [2, 256], strides = [1, 1]} : vector<16x256xf32> to vector<2x256xf32>
    %cst_11 = arith.constant dense<0.000000e+00> : vector<2x256xf32>
    %10 = tpu.matmul %7, %6, %cst_11 {dimension_numbers = #tpu.dot_dimension_numbers<[1], [0], [0], [1], [0, 0, 1, 1], [], []>} : vector<2x64xf32>, vector<64x256xf32>, vector<2x256xf32> -> vector<2x256xf32>
    %11 = arith.addf %9, %10 : vector<2x256xf32>
    %12 = vector.extract_strided_slice %11 {offsets = [0, 0], sizes = [2, 64], strides = [1, 1]} : vector<2x256xf32> to vector<2x64xf32>
    %13 = arith.negf %12 : vector<2x64xf32>
    %14 = math.exp %13 : vector<2x64xf32>
    %cst_12 = arith.constant 1.000000e+00 : f32
    %15 = vector.broadcast %cst_12 : f32 to vector<2x64xf32>
    %16 = arith.addf %15, %14 : vector<2x64xf32>
    %17 = arith.divf %15, %16 : vector<2x64xf32>
    %18 = vector.extract_strided_slice %11 {offsets = [0, 64], sizes = [2, 64], strides = [1, 1]} : vector<2x256xf32> to vector<2x64xf32>
    %19 = arith.negf %18 : vector<2x64xf32>
    %20 = math.exp %19 : vector<2x64xf32>
    %cst_13 = arith.constant 1.000000e+00 : f32
    %21 = vector.broadcast %cst_13 : f32 to vector<2x64xf32>
    %22 = arith.addf %21, %20 : vector<2x64xf32>
    %23 = arith.divf %21, %22 : vector<2x64xf32>
    %24 = vector.extract_strided_slice %11 {offsets = [0, 128], sizes = [2, 64], strides = [1, 1]} : vector<2x256xf32> to vector<2x64xf32>
    %25 = math.tanh %24 : vector<2x64xf32>
    %26 = vector.extract_strided_slice %11 {offsets = [0, 192], sizes = [2, 64], strides = [1, 1]} : vector<2x256xf32> to vector<2x64xf32>
    %27 = arith.negf %26 : vector<2x64xf32>
    %28 = math.exp %27 : vector<2x64xf32>
    %cst_14 = arith.constant 1.000000e+00 : f32
    %29 = vector.broadcast %cst_14 : f32 to vector<2x64xf32>
    %30 = arith.addf %29, %28 : vector<2x64xf32>
    %31 = arith.divf %29, %30 : vector<2x64xf32>
    %32 = arith.mulf %23, %8 : vector<2x64xf32>
    %33 = arith.mulf %17, %25 : vector<2x64xf32>
    %34 = arith.addf %32, %33 : vector<2x64xf32>
    %35 = math.tanh %34 : vector<2x64xf32>
    %36 = arith.mulf %31, %35 : vector<2x64xf32>
    %37 = vector.extract_strided_slice %5 {offsets = [2, 0], sizes = [2, 256], strides = [1, 1]} : vector<16x256xf32> to vector<2x256xf32>
    %cst_15 = arith.constant dense<0.000000e+00> : vector<2x256xf32>
    %38 = tpu.matmul %36, %6, %cst_15 {dimension_numbers = #tpu.dot_dimension_numbers<[1], [0], [0], [1], [0, 0, 1, 1], [], []>} : vector<2x64xf32>, vector<64x256xf32>, vector<2x256xf32> -> vector<2x256xf32>
    %39 = arith.addf %37, %38 : vector<2x256xf32>
    %40 = vector.extract_strided_slice %39 {offsets = [0, 0], sizes = [2, 64], strides = [1, 1]} : vector<2x256xf32> to vector<2x64xf32>
    %41 = arith.negf %40 : vector<2x64xf32>
    %42 = math.exp %41 : vector<2x64xf32>
    %cst_16 = arith.constant 1.000000e+00 : f32
    %43 = vector.broadcast %cst_16 : f32 to vector<2x64xf32>
    %44 = arith.addf %43, %42 : vector<2x64xf32>
    %45 = arith.divf %43, %44 : vector<2x64xf32>
    %46 = vector.extract_strided_slice %39 {offsets = [0, 64], sizes = [2, 64], strides = [1, 1]} : vector<2x256xf32> to vector<2x64xf32>
    %47 = arith.negf %46 : vector<2x64xf32>
    %48 = math.exp %47 : vector<2x64xf32>
    %cst_17 = arith.constant 1.000000e+00 : f32
    %49 = vector.broadcast %cst_17 : f32 to vector<2x64xf32>
    %50 = arith.addf %49, %48 : vector<2x64xf32>
    %51 = arith.divf %49, %50 : vector<2x64xf32>
    %52 = vector.extract_strided_slice %39 {offsets = [0, 128], sizes = [2, 64], strides = [1, 1]} : vector<2x256xf32> to vector<2x64xf32>
    %53 = math.tanh %52 : vector<2x64xf32>
    %54 = vector.extract_strided_slice %39 {offsets = [0, 192], sizes = [2, 64], strides = [1, 1]} : vector<2x256xf32> to vector<2x64xf32>
    %55 = arith.negf %54 : vector<2x64xf32>
    %56 = math.exp %55 : vector<2x64xf32>
    %cst_18 = arith.constant 1.000000e+00 : f32
    %57 = vector.broadcast %cst_18 : f32 to vector<2x64xf32>
    %58 = arith.addf %57, %56 : vector<2x64xf32>
    %59 = arith.divf %57, %58 : vector<2x64xf32>
    %60 = arith.mulf %51, %34 : vector<2x64xf32>
    %61 = arith.mulf %45, %53 : vector<2x64xf32>
    %62 = arith.addf %60, %61 : vector<2x64xf32>
    %63 = math.tanh %62 : vector<2x64xf32>
    %64 = arith.mulf %59, %63 : vector<2x64xf32>
    %65 = vector.extract_strided_slice %5 {offsets = [4, 0], sizes = [2, 256], strides = [1, 1]} : vector<16x256xf32> to vector<2x256xf32>
    %cst_19 = arith.constant dense<0.000000e+00> : vector<2x256xf32>
    %66 = tpu.matmul %64, %6, %cst_19 {dimension_numbers = #tpu.dot_dimension_numbers<[1], [0], [0], [1], [0, 0, 1, 1], [], []>} : vector<2x64xf32>, vector<64x256xf32>, vector<2x256xf32> -> vector<2x256xf32>
    %67 = arith.addf %65, %66 : vector<2x256xf32>
    %68 = vector.extract_strided_slice %67 {offsets = [0, 0], sizes = [2, 64], strides = [1, 1]} : vector<2x256xf32> to vector<2x64xf32>
    %69 = arith.negf %68 : vector<2x64xf32>
    %70 = math.exp %69 : vector<2x64xf32>
    %cst_20 = arith.constant 1.000000e+00 : f32
    %71 = vector.broadcast %cst_20 : f32 to vector<2x64xf32>
    %72 = arith.addf %71, %70 : vector<2x64xf32>
    %73 = arith.divf %71, %72 : vector<2x64xf32>
    %74 = vector.extract_strided_slice %67 {offsets = [0, 64], sizes = [2, 64], strides = [1, 1]} : vector<2x256xf32> to vector<2x64xf32>
    %75 = arith.negf %74 : vector<2x64xf32>
    %76 = math.exp %75 : vector<2x64xf32>
    %cst_21 = arith.constant 1.000000e+00 : f32
    %77 = vector.broadcast %cst_21 : f32 to vector<2x64xf32>
    %78 = arith.addf %77, %76 : vector<2x64xf32>
    %79 = arith.divf %77, %78 : vector<2x64xf32>
    %80 = vector.extract_strided_slice %67 {offsets = [0, 128], sizes = [2, 64], strides = [1, 1]} : vector<2x256xf32> to vector<2x64xf32>
    %81 = math.tanh %80 : vector<2x64xf32>
    %82 = vector.extract_strided_slice %67 {offsets = [0, 192], sizes = [2, 64], strides = [1, 1]} : vector<2x256xf32> to vector<2x64xf32>
    %83 = arith.negf %82 : vector<2x64xf32>
    %84 = math.exp %83 : vector<2x64xf32>
    %cst_22 = arith.constant 1.000000e+00 : f32
    %85 = vector.broadcast %cst_22 : f32 to vector<2x64xf32>
    %86 = arith.addf %85, %84 : vector<2x64xf32>
    %87 = arith.divf %85, %86 : vector<2x64xf32>
    %88 = arith.mulf %79, %62 : vector<2x64xf32>
    %89 = arith.mulf %73, %81 : vector<2x64xf32>
    %90 = arith.addf %88, %89 : vector<2x64xf32>
    %91 = math.tanh %90 : vector<2x64xf32>
    %92 = arith.mulf %87, %91 : vector<2x64xf32>
    %93 = vector.extract_strided_slice %5 {offsets = [6, 0], sizes = [2, 256], strides = [1, 1]} : vector<16x256xf32> to vector<2x256xf32>
    %cst_23 = arith.constant dense<0.000000e+00> : vector<2x256xf32>
    %94 = tpu.matmul %92, %6, %cst_23 {dimension_numbers = #tpu.dot_dimension_numbers<[1], [0], [0], [1], [0, 0, 1, 1], [], []>} : vector<2x64xf32>, vector<64x256xf32>, vector<2x256xf32> -> vector<2x256xf32>
    %95 = arith.addf %93, %94 : vector<2x256xf32>
    %96 = vector.extract_strided_slice %95 {offsets = [0, 0], sizes = [2, 64], strides = [1, 1]} : vector<2x256xf32> to vector<2x64xf32>
    %97 = arith.negf %96 : vector<2x64xf32>
    %98 = math.exp %97 : vector<2x64xf32>
    %cst_24 = arith.constant 1.000000e+00 : f32
    %99 = vector.broadcast %cst_24 : f32 to vector<2x64xf32>
    %100 = arith.addf %99, %98 : vector<2x64xf32>
    %101 = arith.divf %99, %100 : vector<2x64xf32>
    %102 = vector.extract_strided_slice %95 {offsets = [0, 64], sizes = [2, 64], strides = [1, 1]} : vector<2x256xf32> to vector<2x64xf32>
    %103 = arith.negf %102 : vector<2x64xf32>
    %104 = math.exp %103 : vector<2x64xf32>
    %cst_25 = arith.constant 1.000000e+00 : f32
    %105 = vector.broadcast %cst_25 : f32 to vector<2x64xf32>
    %106 = arith.addf %105, %104 : vector<2x64xf32>
    %107 = arith.divf %105, %106 : vector<2x64xf32>
    %108 = vector.extract_strided_slice %95 {offsets = [0, 128], sizes = [2, 64], strides = [1, 1]} : vector<2x256xf32> to vector<2x64xf32>
    %109 = math.tanh %108 : vector<2x64xf32>
    %110 = vector.extract_strided_slice %95 {offsets = [0, 192], sizes = [2, 64], strides = [1, 1]} : vector<2x256xf32> to vector<2x64xf32>
    %111 = arith.negf %110 : vector<2x64xf32>
    %112 = math.exp %111 : vector<2x64xf32>
    %cst_26 = arith.constant 1.000000e+00 : f32
    %113 = vector.broadcast %cst_26 : f32 to vector<2x64xf32>
    %114 = arith.addf %113, %112 : vector<2x64xf32>
    %115 = arith.divf %113, %114 : vector<2x64xf32>
    %116 = arith.mulf %107, %90 : vector<2x64xf32>
    %117 = arith.mulf %101, %109 : vector<2x64xf32>
    %118 = arith.addf %116, %117 : vector<2x64xf32>
    %119 = math.tanh %118 : vector<2x64xf32>
    %120 = arith.mulf %115, %119 : vector<2x64xf32>
    %121 = vector.extract_strided_slice %5 {offsets = [8, 0], sizes = [2, 256], strides = [1, 1]} : vector<16x256xf32> to vector<2x256xf32>
    %cst_27 = arith.constant dense<0.000000e+00> : vector<2x256xf32>
    %122 = tpu.matmul %120, %6, %cst_27 {dimension_numbers = #tpu.dot_dimension_numbers<[1], [0], [0], [1], [0, 0, 1, 1], [], []>} : vector<2x64xf32>, vector<64x256xf32>, vector<2x256xf32> -> vector<2x256xf32>
    %123 = arith.addf %121, %122 : vector<2x256xf32>
    %124 = vector.extract_strided_slice %123 {offsets = [0, 0], sizes = [2, 64], strides = [1, 1]} : vector<2x256xf32> to vector<2x64xf32>
    %125 = arith.negf %124 : vector<2x64xf32>
    %126 = math.exp %125 : vector<2x64xf32>
    %cst_28 = arith.constant 1.000000e+00 : f32
    %127 = vector.broadcast %cst_28 : f32 to vector<2x64xf32>
    %128 = arith.addf %127, %126 : vector<2x64xf32>
    %129 = arith.divf %127, %128 : vector<2x64xf32>
    %130 = vector.extract_strided_slice %123 {offsets = [0, 64], sizes = [2, 64], strides = [1, 1]} : vector<2x256xf32> to vector<2x64xf32>
    %131 = arith.negf %130 : vector<2x64xf32>
    %132 = math.exp %131 : vector<2x64xf32>
    %cst_29 = arith.constant 1.000000e+00 : f32
    %133 = vector.broadcast %cst_29 : f32 to vector<2x64xf32>
    %134 = arith.addf %133, %132 : vector<2x64xf32>
    %135 = arith.divf %133, %134 : vector<2x64xf32>
    %136 = vector.extract_strided_slice %123 {offsets = [0, 128], sizes = [2, 64], strides = [1, 1]} : vector<2x256xf32> to vector<2x64xf32>
    %137 = math.tanh %136 : vector<2x64xf32>
    %138 = vector.extract_strided_slice %123 {offsets = [0, 192], sizes = [2, 64], strides = [1, 1]} : vector<2x256xf32> to vector<2x64xf32>
    %139 = arith.negf %138 : vector<2x64xf32>
    %140 = math.exp %139 : vector<2x64xf32>
    %cst_30 = arith.constant 1.000000e+00 : f32
    %141 = vector.broadcast %cst_30 : f32 to vector<2x64xf32>
    %142 = arith.addf %141, %140 : vector<2x64xf32>
    %143 = arith.divf %141, %142 : vector<2x64xf32>
    %144 = arith.mulf %135, %118 : vector<2x64xf32>
    %145 = arith.mulf %129, %137 : vector<2x64xf32>
    %146 = arith.addf %144, %145 : vector<2x64xf32>
    %147 = math.tanh %146 : vector<2x64xf32>
    %148 = arith.mulf %143, %147 : vector<2x64xf32>
    %149 = vector.extract_strided_slice %5 {offsets = [10, 0], sizes = [2, 256], strides = [1, 1]} : vector<16x256xf32> to vector<2x256xf32>
    %cst_31 = arith.constant dense<0.000000e+00> : vector<2x256xf32>
    %150 = tpu.matmul %148, %6, %cst_31 {dimension_numbers = #tpu.dot_dimension_numbers<[1], [0], [0], [1], [0, 0, 1, 1], [], []>} : vector<2x64xf32>, vector<64x256xf32>, vector<2x256xf32> -> vector<2x256xf32>
    %151 = arith.addf %149, %150 : vector<2x256xf32>
    %152 = vector.extract_strided_slice %151 {offsets = [0, 0], sizes = [2, 64], strides = [1, 1]} : vector<2x256xf32> to vector<2x64xf32>
    %153 = arith.negf %152 : vector<2x64xf32>
    %154 = math.exp %153 : vector<2x64xf32>
    %cst_32 = arith.constant 1.000000e+00 : f32
    %155 = vector.broadcast %cst_32 : f32 to vector<2x64xf32>
    %156 = arith.addf %155, %154 : vector<2x64xf32>
    %157 = arith.divf %155, %156 : vector<2x64xf32>
    %158 = vector.extract_strided_slice %151 {offsets = [0, 64], sizes = [2, 64], strides = [1, 1]} : vector<2x256xf32> to vector<2x64xf32>
    %159 = arith.negf %158 : vector<2x64xf32>
    %160 = math.exp %159 : vector<2x64xf32>
    %cst_33 = arith.constant 1.000000e+00 : f32
    %161 = vector.broadcast %cst_33 : f32 to vector<2x64xf32>
    %162 = arith.addf %161, %160 : vector<2x64xf32>
    %163 = arith.divf %161, %162 : vector<2x64xf32>
    %164 = vector.extract_strided_slice %151 {offsets = [0, 128], sizes = [2, 64], strides = [1, 1]} : vector<2x256xf32> to vector<2x64xf32>
    %165 = math.tanh %164 : vector<2x64xf32>
    %166 = vector.extract_strided_slice %151 {offsets = [0, 192], sizes = [2, 64], strides = [1, 1]} : vector<2x256xf32> to vector<2x64xf32>
    %167 = arith.negf %166 : vector<2x64xf32>
    %168 = math.exp %167 : vector<2x64xf32>
    %cst_34 = arith.constant 1.000000e+00 : f32
    %169 = vector.broadcast %cst_34 : f32 to vector<2x64xf32>
    %170 = arith.addf %169, %168 : vector<2x64xf32>
    %171 = arith.divf %169, %170 : vector<2x64xf32>
    %172 = arith.mulf %163, %146 : vector<2x64xf32>
    %173 = arith.mulf %157, %165 : vector<2x64xf32>
    %174 = arith.addf %172, %173 : vector<2x64xf32>
    %175 = math.tanh %174 : vector<2x64xf32>
    %176 = arith.mulf %171, %175 : vector<2x64xf32>
    %177 = vector.extract_strided_slice %5 {offsets = [12, 0], sizes = [2, 256], strides = [1, 1]} : vector<16x256xf32> to vector<2x256xf32>
    %cst_35 = arith.constant dense<0.000000e+00> : vector<2x256xf32>
    %178 = tpu.matmul %176, %6, %cst_35 {dimension_numbers = #tpu.dot_dimension_numbers<[1], [0], [0], [1], [0, 0, 1, 1], [], []>} : vector<2x64xf32>, vector<64x256xf32>, vector<2x256xf32> -> vector<2x256xf32>
    %179 = arith.addf %177, %178 : vector<2x256xf32>
    %180 = vector.extract_strided_slice %179 {offsets = [0, 0], sizes = [2, 64], strides = [1, 1]} : vector<2x256xf32> to vector<2x64xf32>
    %181 = arith.negf %180 : vector<2x64xf32>
    %182 = math.exp %181 : vector<2x64xf32>
    %cst_36 = arith.constant 1.000000e+00 : f32
    %183 = vector.broadcast %cst_36 : f32 to vector<2x64xf32>
    %184 = arith.addf %183, %182 : vector<2x64xf32>
    %185 = arith.divf %183, %184 : vector<2x64xf32>
    %186 = vector.extract_strided_slice %179 {offsets = [0, 64], sizes = [2, 64], strides = [1, 1]} : vector<2x256xf32> to vector<2x64xf32>
    %187 = arith.negf %186 : vector<2x64xf32>
    %188 = math.exp %187 : vector<2x64xf32>
    %cst_37 = arith.constant 1.000000e+00 : f32
    %189 = vector.broadcast %cst_37 : f32 to vector<2x64xf32>
    %190 = arith.addf %189, %188 : vector<2x64xf32>
    %191 = arith.divf %189, %190 : vector<2x64xf32>
    %192 = vector.extract_strided_slice %179 {offsets = [0, 128], sizes = [2, 64], strides = [1, 1]} : vector<2x256xf32> to vector<2x64xf32>
    %193 = math.tanh %192 : vector<2x64xf32>
    %194 = vector.extract_strided_slice %179 {offsets = [0, 192], sizes = [2, 64], strides = [1, 1]} : vector<2x256xf32> to vector<2x64xf32>
    %195 = arith.negf %194 : vector<2x64xf32>
    %196 = math.exp %195 : vector<2x64xf32>
    %cst_38 = arith.constant 1.000000e+00 : f32
    %197 = vector.broadcast %cst_38 : f32 to vector<2x64xf32>
    %198 = arith.addf %197, %196 : vector<2x64xf32>
    %199 = arith.divf %197, %198 : vector<2x64xf32>
    %200 = arith.mulf %191, %174 : vector<2x64xf32>
    %201 = arith.mulf %185, %193 : vector<2x64xf32>
    %202 = arith.addf %200, %201 : vector<2x64xf32>
    %203 = math.tanh %202 : vector<2x64xf32>
    %204 = arith.mulf %199, %203 : vector<2x64xf32>
    %205 = vector.extract_strided_slice %5 {offsets = [14, 0], sizes = [2, 256], strides = [1, 1]} : vector<16x256xf32> to vector<2x256xf32>
    %cst_39 = arith.constant dense<0.000000e+00> : vector<2x256xf32>
    %206 = tpu.matmul %204, %6, %cst_39 {dimension_numbers = #tpu.dot_dimension_numbers<[1], [0], [0], [1], [0, 0, 1, 1], [], []>} : vector<2x64xf32>, vector<64x256xf32>, vector<2x256xf32> -> vector<2x256xf32>
    %207 = arith.addf %205, %206 : vector<2x256xf32>
    %208 = vector.extract_strided_slice %207 {offsets = [0, 0], sizes = [2, 64], strides = [1, 1]} : vector<2x256xf32> to vector<2x64xf32>
    %209 = arith.negf %208 : vector<2x64xf32>
    %210 = math.exp %209 : vector<2x64xf32>
    %cst_40 = arith.constant 1.000000e+00 : f32
    %211 = vector.broadcast %cst_40 : f32 to vector<2x64xf32>
    %212 = arith.addf %211, %210 : vector<2x64xf32>
    %213 = arith.divf %211, %212 : vector<2x64xf32>
    %214 = vector.extract_strided_slice %207 {offsets = [0, 64], sizes = [2, 64], strides = [1, 1]} : vector<2x256xf32> to vector<2x64xf32>
    %215 = arith.negf %214 : vector<2x64xf32>
    %216 = math.exp %215 : vector<2x64xf32>
    %cst_41 = arith.constant 1.000000e+00 : f32
    %217 = vector.broadcast %cst_41 : f32 to vector<2x64xf32>
    %218 = arith.addf %217, %216 : vector<2x64xf32>
    %219 = arith.divf %217, %218 : vector<2x64xf32>
    %220 = vector.extract_strided_slice %207 {offsets = [0, 128], sizes = [2, 64], strides = [1, 1]} : vector<2x256xf32> to vector<2x64xf32>
    %221 = math.tanh %220 : vector<2x64xf32>
    %222 = vector.extract_strided_slice %207 {offsets = [0, 192], sizes = [2, 64], strides = [1, 1]} : vector<2x256xf32> to vector<2x64xf32>
    %223 = arith.negf %222 : vector<2x64xf32>
    %224 = math.exp %223 : vector<2x64xf32>
    %cst_42 = arith.constant 1.000000e+00 : f32
    %225 = vector.broadcast %cst_42 : f32 to vector<2x64xf32>
    %226 = arith.addf %225, %224 : vector<2x64xf32>
    %227 = arith.divf %225, %226 : vector<2x64xf32>
    %228 = arith.mulf %219, %202 : vector<2x64xf32>
    %229 = arith.mulf %213, %221 : vector<2x64xf32>
    %230 = arith.addf %228, %229 : vector<2x64xf32>
    %231 = math.tanh %230 : vector<2x64xf32>
    %232 = arith.mulf %227, %231 : vector<2x64xf32>
    %c0_43 = arith.constant 0 : index
    %c0_44 = arith.constant 0 : index
    %233 = vector.load %arg10[%c0_43, %c0_44] : memref<2x64xf32, #tpu.memory_space<vmem>>, vector<2x64xf32>
    tpu.vector_store %arg10[%c0_43, %c0_44], %232 {strides = array<i32>} : memref<2x64xf32, #tpu.memory_space<vmem>>, vector<2x64xf32>,
    %c0_45 = arith.constant 0 : index
    %c0_46 = arith.constant 0 : index
    %234 = vector.load %arg11[%c0_45, %c0_46] : memref<2x64xf32, #tpu.memory_space<vmem>>, vector<2x64xf32>
    tpu.vector_store %arg11[%c0_45, %c0_46], %230 {strides = array<i32>} : memref<2x64xf32, #tpu.memory_space<vmem>>, vector<2x64xf32>,
    %235 = tpu.concatenate %36, %64, %92, %120, %148, %176, %204, %232 in 0 : vector<2x64xf32>, vector<2x64xf32>, vector<2x64xf32>, vector<2x64xf32>, vector<2x64xf32>, vector<2x64xf32>, vector<2x64xf32>, vector<2x64xf32> -> vector<16x64xf32>
    %c0_47 = arith.constant 0 : index
    %c0_48 = arith.constant 0 : index
    %236 = vector.load %arg7[%c0_47, %c0_48] : memref<64x128xf32, #tpu.memory_space<vmem>>, vector<64x128xf32>
    %cst_49 = arith.constant dense<0.000000e+00> : vector<16x128xf32>
    %237 = tpu.matmul %235, %236, %cst_49 {dimension_numbers = #tpu.dot_dimension_numbers<[1], [0], [0], [1], [0, 0, 1, 1], [], []>} : vector<16x64xf32>, vector<64x128xf32>, vector<16x128xf32> -> vector<16x128xf32>
    %c0_50 = arith.constant 0 : index
    %c0_51 = arith.constant 0 : index
    %238 = vector.load %arg8[%c0_50, %c0_51] : memref<1x128xf32, #tpu.memory_space<vmem>>, vector<1x128xf32>
    %239 = vector.broadcast %238 : vector<1x128xf32> to vector<16x128xf32>
    %240 = arith.addf %237, %239 : vector<16x128xf32>
    %c0_52 = arith.constant 0 : index
    %c0_53 = arith.constant 0 : index
    %241 = vector.load %arg9[%c0_52, %c0_53] : memref<16x128xf32, #tpu.memory_space<vmem>>, vector<16x128xf32>
    tpu.vector_store %arg9[%c0_52, %c0_53], %240 {strides = array<i32>} : memref<16x128xf32, #tpu.memory_space<vmem>>, vector<16x128xf32>,
    return
  }
  func.func @transform_0(%arg0: i32) -> (i32, i32) {
    %c0_i32 = arith.constant 0 : i32
    %c0_i32_0 = arith.constant 0 : i32
    %c0_i32_1 = arith.constant 0 : i32
    return %c0_i32, %c0_i32_0 : i32, i32
  }
  func.func @transform_1(%arg0: i32) -> (i32, i32) {
    %c0_i32 = arith.constant 0 : i32
    %c0_i32_0 = arith.constant 0 : i32
    %c0_i32_1 = arith.constant 0 : i32
    return %c0_i32, %c0_i32_0 : i32, i32
  }
  func.func @transform_2(%arg0: i32) -> (i32, i32) {
    %c0_i32 = arith.constant 0 : i32
    %c0_i32_0 = arith.constant 0 : i32
    %c0_i32_1 = arith.constant 0 : i32
    return %c0_i32, %c0_i32_0 : i32, i32
  }
  func.func @transform_3(%arg0: i32) -> (i32, i32) {
    %c0_i32 = arith.constant 0 : i32
    %c0_i32_0 = arith.constant 0 : i32
    %c0_i32_1 = arith.constant 0 : i32
    return %c0_i32, %c0_i32_0 : i32, i32
  }
  func.func @transform_4(%arg0: i32) -> (i32, i32) {
    %c0_i32 = arith.constant 0 : i32
    %c0_i32_0 = arith.constant 0 : i32
    %c0_i32_1 = arith.constant 0 : i32
    return %c0_i32, %c0_i32_0 : i32, i32
  }
  func.func @transform_5(%arg0: i32) -> (i32, i32) {
    %c0_i32 = arith.constant 0 : i32
    %c0_i32_0 = arith.constant 0 : i32
    %c0_i32_1 = arith.constant 0 : i32
    return %c0_i32, %c0_i32_0 : i32, i32
  }
  func.func @transform_6(%arg0: i32) -> (i32, i32) {
    %c0_i32 = arith.constant 0 : i32
    %c0_i32_0 = arith.constant 0 : i32
    %c0_i32_1 = arith.constant 0 : i32
    return %c0_i32, %c0_i32_0 : i32, i32
  }
  func.func @transform_7(%arg0: i32) -> (i32, i32) {
    %c0_i32 = arith.constant 0 : i32
    %c0_i32_0 = arith.constant 0 : i32
    %c0_i32_1 = arith.constant 0 : i32
    return %c0_i32, %c0_i32_0 : i32, i32
  }
  func.func @transform_8(%arg0: i32) -> (i32, i32) {
    %c0_i32 = arith.constant 0 : i32
    %c0_i32_0 = arith.constant 0 : i32
    %c0_i32_1 = arith.constant 0 : i32
    return %c0_i32, %c0_i32_0 : i32, i32
  }
  func.func @transform_9(%arg0: i32) -> (i32, i32) {
    %c0_i32 = arith.constant 0 : i32
    %c0_i32_0 = arith.constant 0 : i32
    %c0_i32_1 = arith.constant 0 : i32
    return %c0_i32, %c0_i32_0 : i32, i32
  }
  func.func @transform_10(%arg0: i32) -> (i32, i32) {
    %c0_i32 = arith.constant 0 : i32
    %c0_i32_0 = arith.constant 0 : i32
    %c0_i32_1 = arith.constant 0 : i32
    return %c0_i32, %c0_i32_0 : i32, i32
  }
}

</mosaic_0001>

<bundles_post_ra>
// kernel: tpu_custom_call.1
= control target key start
LH: loop header
LB: loop body
LE: loop exit
PB: predicated region body
PF: predicated region fallthrough
CT: control target
= control target key end

     0   :  { %16 = vsyncpa [#allocation3], 0  ;;  %s2113_s0 = inlined_call_operand.hbm [shape: f32[16,27], index: 0, kind: input, shape index: {}]   ;;  %s2114_s1 = inlined_call_operand.vmem [shape: f32[2,64], index: 1, kind: input, shape index: {}]   ;;  %s2115_s2 = inlined_call_operand.vmem [shape: f32[2,64], index: 2, kind: input, shape index: {}]   ;;  %s2116_s3 = inlined_call_operand.hbm [shape: f32[27,256], index: 3, kind: input, shape index: {}]   ;;  %s2117_s4 = inlined_call_operand.hbm [shape: f32[64,256], index: 4, kind: input, shape index: {}]   ;;  %s2118_s5 = inlined_call_operand.vmem [shape: f32[1,256], index: 5, kind: input, shape index: {}]   ;;  %s2119_s6 = inlined_call_operand.hbm [shape: f32[64,128], index: 6, kind: input, shape index: {}]   ;;  %s2120_s7 = inlined_call_operand.vmem [shape: f32[1,128], index: 7, kind: input, shape index: {}]   ;;  %s2121_s8 = inlined_call_operand.hbm [shape: f32[16,128], index: 8, kind: output, shape index: {0}]   ;;  %s2122_s9 = inlined_call_operand.hbm [shape: f32[2,64], index: 9, kind: output, shape index: {1}]   ;;  %s2123_s10 = inlined_call_operand.hbm [shape: f32[2,64], index: 10, kind: output, shape index: {2}]  }
   0x1   :  { %17 = vsyncpa [#allocation6], 0 }
   0x2   :  { %18 = vsyncpa [#allocation9], 0 }
   0x3   :  { %19 = vsyncpa [#allocation4], 0 }
   0x4   :  { %20 = vsyncpa [#allocation12], 0  ;;  %s1741_s13 = smov [#allocation5]   ;;  %s1577_s17 = scalar_lea.hbm %s2116_s3, 1024 }
   0x5   :  { %s42_s14 = sshll.u32 %s1741_s13, 4  ;;  %p1578_p0 = scmp.ne.s32.totalorder %s2116_s3, %s1577_s17  ;;  %s43_s14 = int_to_ptr.vmem [resolvable:$true] %s42_s14 }
   0x6   :  { %p1581_p1 = scmp.lt.u32.totalorder %s1577_s17, %s2116_s3 }
   0x8   :  { %p1583_p2 = pnand %p1581_p1, %p1578_p0 }
   0xa   :  { %1586 = shalt.err (!%p1583_p2)
}
   0xb   :  { %s1587_s22 = scalar_lea.vmem %s43_s14, 1024  ;;  %p1592_p4 = scmp.lt.s32.totalorder %s43_s14, %s43_s14 }
   0xc   :  { %p1588_p3 = scmp.ne.s32.totalorder %s43_s14, %s1587_s22  ;;  %p1593_p5 = scmp.lt.s32.totalorder %s1587_s22, %s1587_s22 }
   0xe   :  { %p1594_p6 = por %p1593_p5, %p1592_p4 }
  0x10   :  { %p1595_p7 = pnand %p1594_p6, %p1588_p3 }
  0x12   :  { %1598 = shalt.err (!%p1595_p7)
}
  0x13   :  { %s1742_s23 = smov 256   ;;  %s1743_s24 = smov 16  }
  0x14   :  { %48 = dma.hbm_to_vmem [thread:$0]  %s2116_s3, 1024, %s43_s14, [#allocation6], %s1742_s23, %s1742_s23, %s1743_s24  }
  0x15   :  { %s1744_s27 = smov [#allocation2]   ;;  %s1599_s11 = scalar_lea.hbm %s2113_s0, 256 }
  0x16   :  { %s26_s28 = sshll.u32 %s1744_s27, 4  ;;  %p1600_p8 = scmp.ne.s32.totalorder %s2113_s0, %s1599_s11  ;;  %s27_s28 = int_to_ptr.vmem [resolvable:$true] %s26_s28 }
  0x17   :  { %p1603_p9 = scmp.lt.u32.totalorder %s1599_s11, %s2113_s0 }
  0x19   :  { %p1605_p10 = pnand %p1603_p9, %p1600_p8 }
  0x1b   :  { %1608 = shalt.err (!%p1605_p10)
}
  0x1c   :  { %s1609_s17 = scalar_lea.vmem %s27_s28, 256  ;;  %p1614_p12 = scmp.lt.s32.totalorder %s27_s28, %s27_s28 }
  0x1d   :  { %p1610_p11 = scmp.ne.s32.totalorder %s27_s28, %s1609_s17  ;;  %p1615_p13 = scmp.lt.s32.totalorder %s1609_s17, %s1609_s17 }
  0x1f   :  { %p1616_p0 = por %p1615_p13, %p1614_p12 }
  0x21   :  { %p1617_p1 = pnand %p1616_p0, %p1610_p11 }
  0x23   :  { %1620 = shalt.err (!%p1617_p1)
}
  0x24   :  { %s1745_s3 = smov 128   ;;  %s1746_s14 = smov 8  }
  0x25   :  { %32 = dma.hbm_to_vmem [thread:$0]  %s2113_s0, 256, %s27_s28, [#allocation3], %s1745_s3, %s1745_s3, %s1746_s14  }
  0x26   :  { %s1747_s20 = smov [#allocation7]   ;;  %s1748_s22 = smov [#allocation8]  }
  0x27   :  { %s54_s21 = sshll.u32 %s1747_s20, 4  ;;  %s68_s25 = sshll.u32 %s1748_s22, 4  ;;  %s55_s21 = int_to_ptr.vmem [resolvable:$true] %s54_s21  ;;  %s1840_s25 = int_to_ptr.vmem [resolvable:$true] %s68_s25 }
  0x28   :  { %s1621_s29 = scalar_lea.hbm %s2117_s4, 2048 }
  0x29   :  { %p1622_p2 = scmp.ne.s32.totalorder %s2117_s4, %s1621_s29  ;;  %p1625_p3 = scmp.lt.u32.totalorder %s1621_s29, %s2117_s4 }
  0x2b   :  { %p1627_p4 = pnand %p1625_p3, %p1622_p2 }
  0x2d   :  { %1630 = shalt.err (!%p1627_p4)
}
  0x2e   :  { %s1631_s0 = scalar_lea.vmem %s55_s21, 2048  ;;  %p1636_p6 = scmp.lt.s32.totalorder %s55_s21, %s55_s21 }
  0x2f   :  { %p1632_p5 = scmp.ne.s32.totalorder %s55_s21, %s1631_s0  ;;  %p1637_p7 = scmp.lt.s32.totalorder %s1631_s0, %s1631_s0 }
  0x31   :  { %p1638_p8 = por %p1637_p7, %p1636_p6 }
  0x33   :  { %p1639_p9 = pnand %p1638_p8, %p1632_p5 }
  0x35   :  { %1642 = shalt.err (!%p1639_p9)
}
  0x36   :  { %60 = dma.hbm_to_vmem [thread:$0]  %s2117_s4, 2048, %s55_s21, [#allocation6], %s1742_s23, %s1742_s23, %s1743_s24  }
  0x37   :  { %s1643_s18 = scalar_lea.hbm %s2119_s6, 1024 }
  0x38   :  { %p1644_p10 = scmp.ne.s32.totalorder %s2119_s6, %s1643_s18  ;;  %p1647_p11 = scmp.lt.u32.totalorder %s1643_s18, %s2119_s6 }
  0x3a   :  { %p1649_p12 = pnand %p1647_p11, %p1644_p10 }
  0x3c   :  { %1652 = shalt.err (!%p1649_p12)
}
  0x3d   :  { %s1653_s27 = scalar_lea.vmem %s1840_s25, 1024  ;;  %p1658_p0 = scmp.lt.s32.totalorder %s1840_s25, %s1840_s25 }
  0x3e   :  { %p1654_p13 = scmp.ne.s32.totalorder %s1840_s25, %s1653_s27  ;;  %p1659_p1 = scmp.lt.s32.totalorder %s1653_s27, %s1653_s27 }
  0x40   :  { %p1660_p2 = por %p1659_p1, %p1658_p0 }
  0x42   :  { %p1661_p3 = pnand %p1660_p2, %p1654_p13 }
  0x44   :  { %1664 = shalt.err (!%p1661_p3)
}
  0x45   :  { %74 = dma.hbm_to_vmem [thread:$0]  %s2119_s6, 1024, %s1840_s25, [#allocation9], %s1745_s3, %s1745_s3, %s1746_s14  }
  0x46   :  { %1731 = dma.done.wait [#allocation3], 256  }
  0x47   :  { %1732 = vsyncadd [#allocation3], 4294967040 }
  0x48   :  { %1733 = dma.done.wait [#allocation6], 3072  }
  0x49   :  { %1734 = vsyncadd [#allocation6], 4294964224 }
  0x4a   :  { %1735 = dma.done.wait [#allocation9], 1024  }
  0x4b   :  { %1736 = vsyncadd [#allocation9], 4294966272  ;;  %v1749_v0 = vmov 0.0   ;;  %vm118_vm0 = vcmask 1042432   ;;  %vm1750_vm1 = vmmov 1   ;;  %v203_v2 = vld [vmem:[#allocation7 + $0x8] sm:$0xff]  ;;  %v101_v41 = vlaneseq }
  0x4c   :  { %189 = vmatprep.mubr.f32.mxu0 %v1749_v0  ;;  %288 = vmatprep.mubr.f32.mxu1 %v1749_v0  ;;  %vm1879_vm2 = vmpackc.low %vm118_vm0, %vm1750_vm1  ;;  %v205_v3 = vld [vmem:[#allocation7 + $0x18] sm:$0xff]  ;;  %v202_v4 = vld [vmem:[#allocation7] sm:$0xff]  ;;  %s1751_s21 = smov 64   ;;  %vm111_vm3 = vcmask 220160   ;;  %vm220_vm4 = vcmask 523264   ;;  %vm1096_vm5 = vcmask 1041408  }
  0x4d   :  { %v1883_v5 = vpack.c.bf16 %v205_v3, %v203_v2  ;;  %v204_v6 = vld [vmem:[#allocation7 + $0x10] sm:$0xff]  ;;  %v207_v7 = vld [vmem:[#allocation7 + $0x28] sm:$0xff]  ;;  %v209_v8 = vld [vmem:[#allocation7 + $0x38] sm:$0xff]  ;;  %v102_v42 = vshrl.u32 %v101_v41, 7  ;;  %vm1098_vm6 = vcmask 1043456   ;;  %vm1100_vm7 = vcmask 1045504  }
  0x4e   :  { %v1885_v9 = vpack.c.bf16 %v204_v6, %v202_v4  ;;  %v1887_v10 = vpack.c.bf16 %v209_v8, %v207_v7  ;;  %v92_v11 = vld [vmem:[#allocation5 + $0x8] sm:$0xff]  ;;  %v94_v12 = vld [vmem:[#allocation5 + $0x18] sm:$0xff]  ;;  %v206_v13 = vld [vmem:[#allocation7 + $0x20] sm:$0xff]  ;;  %vm1089_vm8 = vcmask 523270  }
  0x4f   :  { %1324 = vmatprep.subr.bf16.mxu1 %v1883_v5  ;;  %v1313_v14 = vpack.c.bf16 %v94_v12, %v92_v11  ;;  %v208_v15 = vld [vmem:[#allocation7 + $0x30] sm:$0xff]  ;;  %v91_v16 = vld [vmem:[#allocation5] sm:$0xff]  ;;  %v211_v20 = vld [vmem:[#allocation7 + $0x48] sm:$0xff]  ;;  %v103_v43 = vsub.s32 0, %v102_v42  ;;  %v107_v50 = vsub.s32 1, %v102_v42 }
  0x50   :  { %v93_v17 = vld [vmem:[#allocation5 + $0x10] sm:$0xff]  ;;  %1326 = vmatpush1.bf16.msra.mxu1 %v1885_v9  ;;  %v1891_v18 = vpack.c.bf16 %v208_v15, %v206_v13  ;;  %v213_v21 = vld [vmem:[#allocation7 + $0x58] sm:$0xff]  ;;  %v96_v22 = vld [vmem:[#allocation5 + $0x28] sm:$0xff] }
  0x51   :  { %v1315_v19 = vpack.c.bf16 %v93_v17, %v91_v16  ;;  %1328 = vmatprep.subr.bf16.mxu1 %v1887_v10  ;;  %1314 = vmatprep.subr.bf16.mxu0 %v1313_v14  ;;  %v1894_v23 = vpack.c.bf16 %v213_v21, %v211_v20  ;;  %v98_v24 = vld [vmem:[#allocation5 + $0x38] sm:$0x7]  ;;  %v210_v25 = vld [vmem:[#allocation7 + $0x40] sm:$0xff]  ;;  %v212_v26 = vld [vmem:[#allocation7 + $0x50] sm:$0xff] }
  0x52   :  { %v1317_v27 = vpack.c.bf16 %v98_v24, %v96_v22  ;;  %v95_v28 = vld [vmem:[#allocation5 + $0x20] sm:$0xff]  ;;  %v97_v29 = vld [vmem:[#allocation5 + $0x30] sm:$0x7]  ;;  %v215_v30 = vld [vmem:[#allocation7 + $0x68] sm:$0xff]  ;;  %v1899_v33 = vpack.c.bf16 %v212_v26, %v210_v25 }
  0x53   :  { %1316 = vmatpush1.bf16.msra.mxu0 %v1315_v19  ;;  %v1320_v31 = vpack.c.bf16 %v97_v29, %v95_v28  ;;  %v217_v32 = vld [vmem:[#allocation7 + $0x78] sm:$0xff]  ;;  %v219_v34 = vld [vmem:[%s2115_s2] sm:$0x3]  ;;  %v214_v36 = vld [vmem:[#allocation7 + $0x60] sm:$0xff] }
  0x54   :  { %1330 = vmatpush1.bf16.msra.mxu1 %v1891_v18  ;;  %1319 = vmatprep.subr.msk.bf16.mxu0 %vm1879_vm2, %v1317_v27  ;;  %v1905_v35 = vpack.c.bf16 %v217_v32, %v215_v30  ;;  %v216_v37 = vld [vmem:[#allocation7 + $0x70] sm:$0xff]  ;;  %v90_v62 = vld [vmem:[#allocation2 + $0x8] sm:$0xff] }
  0x55   :  { %1332 = vmatprep.subr.bf16.mxu1 %v1894_v23  ;;  %311 = vrot.lane.b32.xlu0 %v219_v34, %s1751_s21  ;;  %v89_v38 = vld [vmem:[#allocation2] sm:$0xff]  ;;  %v1912_v39 = vpack.c.bf16 %v216_v37, %v214_v36 }
  0x56   :  { %v218_v40 = vld [vmem:[%s2114_s1] sm:$0x3] }
  0x57   :  { %1322 = vmatpush1.bf16.msk.msra.mxu0 %vm1879_vm2, %v1320_v31  ;;  %v99_v44 = vld [vmem:[%s2118_s5] sm:$0x3]  ;;  %s1752_s5 = smov [#allocation11]  }
  0x58   :  { %1340 = vmatprep.subr.bf16.mxu0 %v1883_v5  ;;  %1334 = vmatpush1.bf16.msra.mxu1 %v1899_v33  ;;  %v1943_v45 = vrot.slane %v99_v44, %v103_v43  ;;  %v1949_v54 = vrot.slane %v99_v44, %v107_v50  ;;  %s1225_s30 = sshll.u32 %s1752_s5, 4  ;;  %s1226_s30 = int_to_ptr.vmem [resolvable:$true] %s1225_s30 }
  0x59   :  { %1336 = vmatprep.subr.bf16.mxu1 %v1905_v35  ;;  %s1665_s11 = scalar_lea.vmem %s1226_s30, 32  ;;  %p1670_p5 = scmp.lt.s32.totalorder %s1226_s30, %s1226_s30 }
  0x5a   :  { %1255 = vmatmul.mubr.msk.f32.vlgmr.msra.gmra.mrb[0].mxu0 %vm111_vm3, %v89_v38  ;;  %p1666_p4 = scmp.ne.s32.totalorder %s1226_s30, %s1665_s11  ;;  %p1671_p6 = scmp.lt.s32.totalorder %s1665_s11, %s1665_s11 }
  0x5b   :  { %1342 = vmatpush1.bf16.msra.mxu0 %v1885_v9  ;;  %195 = vmatprep.mubr.f32.mxu0 %v1749_v0 }
  0x5c   :  { %1344 = vmatprep.subr.bf16.mxu0 %v1887_v10  ;;  %1338 = vmatpush1.bf16.msra.mxu1 %v1912_v39  ;;  %p1672_p7 = por %p1671_p6, %p1670_p5 }
  0x5d   :  { %1356 = vmatprep.subr.bf16.mxu1 %v1883_v5 }
  0x5e   :  { %1256 = vmatmul.mubr.msk.f32.gmra.mrb[2].mxu0 %vm111_vm3, %v90_v62  ;;  %p1673_p8 = pnand %p1672_p7, %p1666_p4 }
  0x5f   :  { %1346 = vmatpush1.bf16.msra.mxu0 %v1891_v18  ;;  %1257 = vmatmul.mubr.msk.f32.vlgmr.msra.gmra.mrb[0].mxu1 %vm220_vm4, %v218_v40 }
  0x60   :  { %1348 = vmatprep.subr.bf16.mxu0 %v1894_v23  ;;  %1358 = vmatpush1.bf16.msra.mxu1 %v1885_v9 }
  0x61   :  { %502 = vmatprep.mubr.f32.mxu1 %v1749_v0  ;;  %1360 = vmatprep.subr.bf16.mxu1 %v1887_v10 }
  0x62   :  { %392 = vmatprep.mubr.f32.mxu0 %v1749_v0 }
  0x63   :  { %1350 = vmatpush1.bf16.msra.mxu0 %v1899_v33 }
  0x64   :  { %1352 = vmatprep.subr.bf16.mxu0 %v1905_v35  ;;  %1362 = vmatpush1.bf16.msra.mxu1 %v1891_v18 }
  0x65   :  { %1364 = vmatprep.subr.bf16.mxu1 %v1894_v23 }
  0x67   :  { %1354 = vmatpush1.bf16.msra.mxu0 %v1912_v39 }
  0x68   :  { %1372 = vmatprep.subr.bf16.mxu0 %v1883_v5  ;;  %1366 = vmatpush1.bf16.msra.mxu1 %v1899_v33 }
  0x69   :  { %1368 = vmatprep.subr.bf16.mxu1 %v1905_v35 }
  0x6c   :  { %1370 = vmatpush1.bf16.msra.mxu1 %v1912_v39 }
  0x6d   :  { %1388 = vmatprep.subr.bf16.mxu1 %v1883_v5 }
  0xc7   :  { %v312_v2 = vpop.permute.xlu0 %311 }
 0x12d   :  { %v191_v46 = vpop.f32.mrb[0].mxu0 }
 0x12e   :  { %v193_v47 = vpop.f32.mrb[1].mxu0  ;;  %v1946_v48 = vadd.f32 %v191_v46, %v1943_v45 }
 0x12f   :  { %v1952_v55 = vadd.f32 %v193_v47, %v1949_v54 }
 0x131   :  { %v1962_v13 = vpop.f32.mrb[2].mxu0 }
 0x132   :  { %v290_v49 = vpop.f32.mrb[0].mxu1  ;;  %v1964_v14 = vpop.f32.mrb[3].mxu0 }
 0x133   :  { %v295_v51 = vadd.f32 %v290_v49, %v1946_v48  ;;  %v292_v52 = vpop.f32.mrb[1].mxu1 }
 0x134   :  { %v296_v56 = vadd.f32 %v292_v52, %v1952_v55 }
 0x135   :  { %v1258_v53 = vmul.f32 -1.442695, %v295_v51 }
 0x136   :  { %v1259_v63 = vmul.f32 -1.442695, %v296_v56 }
 0x137   :  { %1481 = vpow2.f32 %v1258_v53 }
 0x138   :  { %1483 = vtanh.f32 %v296_v56 }
 0x141   :  { %v1482_v57 = vpop.eup %1481 }
 0x142   :  { %v300_v58 = vadd.f32 1.0, %v1482_v57  ;;  %v1484_v59 = vpop.eup %1483 }
 0x144   :  { %1485 = vrcp.f32 %v300_v58 }
 0x145   :  { %1487 = vpow2.f32 %v1259_v63 }
 0x14e   :  { %v1486_v60 = vpop.eup %1485 }
 0x14f   :  { %v315_v61 = vmul.f32 %v1486_v60, %v1484_v59  ;;  %v1488_v1 = vpop.eup %1487  ;;  %v314_v4 = vmul.f32 %v1486_v60, %v312_v2 }
 0x150   :  { %v307_v3 = vadd.f32 1.0, %v1488_v1 }
 0x151   :  { %317 = vrot.lane.b32.xlu0 %v315_v61, %s1751_s21 }
 0x152   :  { %1489 = vrcp.f32 %v307_v3 }
 0x15c   :  { %v1490_v8 = vpop.eup %1489 }
 0x1c3   :  { %v318_v6 = vpop.permute.xlu0 %317 }
 0x1c4   :  { %v320_v7 = vadd.f32 %v318_v6, %v314_v4 }
 0x1c6   :  { %1491 = vtanh.f32 %v320_v7  ;;  %v421_v28 = vrot.slane %v320_v7, 6 }
 0x1d0   :  { %v1492_v11 = vpop.eup %1491 }
 0x1d1   :  { %v1958_v12 = vmul.f32 %v1492_v11, %v1490_v8 }
 0x1d3   :  { %324 = vrot.lane.b32.xlu1 %v1958_v12, %s1751_s21 }
 0x245   :  { %v325_v15 = vpop.permute.xlu1 %324 }
 0x246   :  { %1260 = vmatmul.mubr.msk.f32.vlgmr.msra.gmra.mrb[4].mxu0 %vm220_vm4, %v325_v15 }
 0x247   :  { %1374 = vmatpush1.bf16.msra.mxu0 %v1885_v9  ;;  %612 = vmatprep.mubr.f32.mxu0 %v1749_v0 }
 0x248   :  { %1376 = vmatprep.subr.bf16.mxu0 %v1887_v10 }
 0x24b   :  { %1378 = vmatpush1.bf16.msra.mxu0 %v1891_v18 }
 0x24c   :  { %1380 = vmatprep.subr.bf16.mxu0 %v1894_v23 }
 0x24f   :  { %1382 = vmatpush1.bf16.msra.mxu0 %v1899_v33 }
 0x250   :  { %1384 = vmatprep.subr.bf16.mxu0 %v1905_v35 }
 0x253   :  { %1386 = vmatpush1.bf16.msra.mxu0 %v1912_v39 }
 0x254   :  { %1404 = vmatprep.subr.bf16.mxu0 %v1883_v5 }
 0x319   :  { %v394_v16 = vpop.f32.mrb[4].mxu0 }
 0x31a   :  { %v401_v17 = vrot.slane %v394_v16, 6  ;;  %v396_v19 = vpop.f32.mrb[5].mxu0 }
 0x31b   :  { %v402_v22 = vrot.slane %v396_v19, 6 }
 0x31c   :  { %v405_v20 = vadd.f32 %v401_v17, %v1946_v48 }
 0x31d   :  { %v406_v24 = vadd.f32 %v402_v22, %v1952_v55 }
 0x31e   :  { %v1261_v21 = vmul.f32 -1.442695, %v405_v20 }
 0x31f   :  { %v1262_v32 = vmul.f32 -1.442695, %v406_v24 }
 0x320   :  { %1493 = vpow2.f32 %v1261_v21 }
 0x321   :  { %1495 = vtanh.f32 %v406_v24 }
 0x32a   :  { %v1494_v25 = vpop.eup %1493 }
 0x32b   :  { %v410_v26 = vadd.f32 1.0, %v1494_v25  ;;  %v1496_v27 = vpop.eup %1495 }
 0x32d   :  { %1497 = vrcp.f32 %v410_v26 }
 0x32e   :  { %1499 = vpow2.f32 %v1262_v32 }
 0x337   :  { %v1498_v29 = vpop.eup %1497 }
 0x338   :  { %v424_v30 = vmul.f32 %v1498_v29, %v1496_v27  ;;  %v423_v31 = vmul.f32 %v1498_v29, %v421_v28  ;;  %v1500_v34 = vpop.eup %1499 }
 0x339   :  { %v417_v36 = vadd.f32 1.0, %v1500_v34 }
 0x33a   :  { %426 = vrot.lane.b32.xlu1 %v424_v30, %s1751_s21 }
 0x33b   :  { %1501 = vrcp.f32 %v417_v36 }
 0x345   :  { %v1502_v40 = vpop.eup %1501 }
 0x3ac   :  { %v427_v37 = vpop.permute.xlu1 %426 }
 0x3ad   :  { %v429_v38 = vadd.f32 %v427_v37, %v423_v31 }
 0x3af   :  { %1503 = vtanh.f32 %v429_v38  ;;  %v531_v59 = vrot.slane %v429_v38, 6 }
 0x3b9   :  { %v1504_v41 = vpop.eup %1503 }
 0x3ba   :  { %v431_v42 = vmul.f32 %v1504_v41, %v1502_v40 }
 0x3bc   :  { %v433_v43 = vrot.slane %v431_v42, 2  ;;  %v1097_v11 = vsel %vm1096_vm5, %v1958_v12, %v431_v42 }
 0x3be   :  { %434 = vrot.lane.b32.xlu0 %v433_v43, %s1751_s21 }
 0x430   :  { %v435_v44 = vpop.permute.xlu0 %434 }
 0x431   :  { %1263 = vmatmul.mubr.msk.f32.vlgmr.msra.gmra.mrb[2].mxu1 %vm220_vm4, %v435_v44  ;;  %v2025_v44 = vadd.f32 %v1962_v13, %v1943_v45 }
 0x432   :  { %1390 = vmatpush1.bf16.msra.mxu1 %v1885_v9  ;;  %722 = vmatprep.mubr.f32.mxu1 %v1749_v0 }
 0x433   :  { %1392 = vmatprep.subr.bf16.mxu1 %v1887_v10 }
 0x436   :  { %1394 = vmatpush1.bf16.msra.mxu1 %v1891_v18 }
 0x437   :  { %1396 = vmatprep.subr.bf16.mxu1 %v1894_v23 }
 0x43a   :  { %1398 = vmatpush1.bf16.msra.mxu1 %v1899_v33 }
 0x43b   :  { %1400 = vmatprep.subr.bf16.mxu1 %v1905_v35 }
 0x43e   :  { %1402 = vmatpush1.bf16.msra.mxu1 %v1912_v39 }
 0x43f   :  { %1420 = vmatprep.subr.bf16.mxu1 %v1883_v5 }
 0x504   :  { %v504_v46 = vpop.f32.mrb[2].mxu1 }
 0x505   :  { %v511_v47 = vrot.slane %v504_v46, 4  ;;  %v506_v49 = vpop.f32.mrb[3].mxu1 }
 0x506   :  { %v512_v52 = vrot.slane %v506_v49, 4 }
 0x507   :  { %v515_v50 = vadd.f32 %v511_v47, %v1946_v48 }
 0x508   :  { %v516_v53 = vadd.f32 %v512_v52, %v1952_v55 }
 0x509   :  { %v1264_v51 = vmul.f32 -1.442695, %v515_v50 }
 0x50a   :  { %v1265_v63 = vmul.f32 -1.442695, %v516_v53 }
 0x50b   :  { %1505 = vpow2.f32 %v1264_v51  ;;  %v2030_v51 = vadd.f32 %v1964_v14, %v1949_v54 }
 0x50c   :  { %1507 = vtanh.f32 %v516_v53 }
 0x515   :  { %v1506_v56 = vpop.eup %1505 }
 0x516   :  { %v520_v57 = vadd.f32 1.0, %v1506_v56  ;;  %v1508_v58 = vpop.eup %1507 }
 0x518   :  { %1509 = vrcp.f32 %v520_v57 }
 0x519   :  { %1511 = vpow2.f32 %v1265_v63 }
 0x522   :  { %v1510_v60 = vpop.eup %1509 }
 0x523   :  { %v534_v61 = vmul.f32 %v1510_v60, %v1508_v58  ;;  %v533_v62 = vmul.f32 %v1510_v60, %v531_v59  ;;  %v1512_v1 = vpop.eup %1511 }
 0x524   :  { %v527_v2 = vadd.f32 1.0, %v1512_v1 }
 0x525   :  { %536 = vrot.lane.b32.xlu1 %v534_v61, %s1751_s21 }
 0x526   :  { %1513 = vrcp.f32 %v527_v2 }
 0x530   :  { %v1514_v6 = vpop.eup %1513 }
 0x597   :  { %v537_v3 = vpop.permute.xlu1 %536 }
 0x598   :  { %v539_v4 = vadd.f32 %v537_v3, %v533_v62 }
 0x59a   :  { %1515 = vtanh.f32 %v539_v4  ;;  %v641_v29 = vrot.slane %v539_v4, 6 }
 0x5a4   :  { %v1516_v7 = vpop.eup %1515 }
 0x5a5   :  { %v541_v8 = vmul.f32 %v1516_v7, %v1514_v6 }
 0x5a7   :  { %v543_v15 = vrot.slane %v541_v8, 4  ;;  %v1099_v16 = vsel %vm1098_vm6, %v1097_v11, %v541_v8 }
 0x5a9   :  { %544 = vrot.lane.b32.xlu0 %v543_v15, %s1751_s21 }
 0x61b   :  { %v545_v17 = vpop.permute.xlu0 %544 }
 0x61c   :  { %1266 = vmatmul.mubr.msk.f32.vlgmr.msra.gmra.mrb[6].mxu0 %vm220_vm4, %v545_v17 }
 0x61d   :  { %1406 = vmatpush1.bf16.msra.mxu0 %v1885_v9  ;;  %825 = vmatprep.mubr.f32.mxu0 %v1749_v0 }
 0x61e   :  { %1408 = vmatprep.subr.bf16.mxu0 %v1887_v10 }
 0x621   :  { %1410 = vmatpush1.bf16.msra.mxu0 %v1891_v18 }
 0x622   :  { %1412 = vmatprep.subr.bf16.mxu0 %v1894_v23 }
 0x625   :  { %1414 = vmatpush1.bf16.msra.mxu0 %v1899_v33 }
 0x626   :  { %1416 = vmatprep.subr.bf16.mxu0 %v1905_v35 }
 0x629   :  { %1418 = vmatpush1.bf16.msra.mxu0 %v1912_v39 }
 0x62a   :  { %1436 = vmatprep.subr.bf16.mxu0 %v1883_v5 }
 0x6ef   :  { %v614_v12 = vpop.f32.mrb[6].mxu0 }
 0x6f0   :  { %v621_v19 = vrot.slane %v614_v12, 2  ;;  %v616_v20 = vpop.f32.mrb[7].mxu0 }
 0x6f1   :  { %v622_v24 = vrot.slane %v616_v20, 2 }
 0x6f2   :  { %v625_v21 = vadd.f32 %v621_v19, %v1946_v48 }
 0x6f3   :  { %v626_v25 = vadd.f32 %v622_v24, %v1952_v55 }
 0x6f4   :  { %v1267_v22 = vmul.f32 -1.442695, %v625_v21 }
 0x6f5   :  { %v1268_v5 = vmul.f32 -1.442695, %v626_v25 }
 0x6f6   :  { %1517 = vpow2.f32 %v1267_v22 }
 0x6f7   :  { %1519 = vtanh.f32 %v626_v25 }
 0x700   :  { %v1518_v26 = vpop.eup %1517 }
 0x701   :  { %v630_v27 = vadd.f32 1.0, %v1518_v26  ;;  %v1520_v28 = vpop.eup %1519 }
 0x703   :  { %1521 = vrcp.f32 %v630_v27 }
 0x704   :  { %1523 = vpow2.f32 %v1268_v5 }
 0x70d   :  { %v1522_v30 = vpop.eup %1521 }
 0x70e   :  { %v644_v31 = vmul.f32 %v1522_v30, %v1520_v28  ;;  %v643_v32 = vmul.f32 %v1522_v30, %v641_v29  ;;  %v1524_v34 = vpop.eup %1523 }
 0x70f   :  { %v637_v48 = vadd.f32 1.0, %v1524_v34 }
 0x710   :  { %646 = vrot.lane.b32.xlu1 %v644_v31, %s1751_s21 }
 0x711   :  { %1525 = vrcp.f32 %v637_v48 }
 0x71b   :  { %v1526_v55 = vpop.eup %1525 }
 0x782   :  { %v647_v36 = vpop.permute.xlu1 %646 }
 0x783   :  { %v649_v37 = vadd.f32 %v647_v36, %v643_v32 }
 0x785   :  { %1527 = vtanh.f32 %v649_v37  ;;  %v745_v58 = vrot.slane %v649_v37, 6 }
 0x78f   :  { %v1528_v38 = vpop.eup %1527 }
 0x790   :  { %v651_v40 = vmul.f32 %v1528_v38, %v1526_v55 }
 0x792   :  { %v653_v41 = vrot.slane %v651_v40, 6  ;;  %v2011_v42 = vsel %vm1100_vm7, %v1099_v16, %v651_v40 }
 0x794   :  { %654 = vrot.lane.b32.xlu0 %v653_v41, %s1751_s21 }
 0x806   :  { %v655_v43 = vpop.permute.xlu0 %654 }
 0x807   :  { %1269 = vmatmul.mubr.msk.f32.vlgmr.msra.gmra.mrb[4].mxu1 %vm220_vm4, %v655_v43 }
 0x808   :  { %1422 = vmatpush1.bf16.msra.mxu1 %v1885_v9  ;;  %935 = vmatprep.mubr.f32.mxu1 %v1749_v0 }
 0x809   :  { %1424 = vmatprep.subr.bf16.mxu1 %v1887_v10 }
 0x80c   :  { %1426 = vmatpush1.bf16.msra.mxu1 %v1891_v18 }
 0x80d   :  { %1428 = vmatprep.subr.bf16.mxu1 %v1894_v23 }
 0x810   :  { %1430 = vmatpush1.bf16.msra.mxu1 %v1899_v33 }
 0x811   :  { %1432 = vmatprep.subr.bf16.mxu1 %v1905_v35 }
 0x814   :  { %1434 = vmatpush1.bf16.msra.mxu1 %v1912_v39 }
 0x8da   :  { %v724_v46 = vpop.f32.mrb[4].mxu1 }
 0x8db   :  { %v729_v47 = vadd.f32 %v724_v46, %v2025_v44  ;;  %v726_v49 = vpop.f32.mrb[5].mxu1 }
 0x8dc   :  { %v730_v52 = vadd.f32 %v726_v49, %v2030_v51 }
 0x8dd   :  { %v1270_v50 = vmul.f32 -1.442695, %v729_v47 }
 0x8de   :  { %v1271_v60 = vmul.f32 -1.442695, %v730_v52 }
 0x8df   :  { %1529 = vpow2.f32 %v1270_v50 }
 0x8e0   :  { %1531 = vtanh.f32 %v730_v52 }
 0x8e9   :  { %v1530_v53 = vpop.eup %1529 }
 0x8ea   :  { %v734_v56 = vadd.f32 1.0, %v1530_v53  ;;  %v1532_v57 = vpop.eup %1531 }
 0x8ec   :  { %1533 = vrcp.f32 %v734_v56 }
 0x8ed   :  { %1535 = vpow2.f32 %v1271_v60 }
 0x8f6   :  { %v1534_v45 = vpop.eup %1533 }
 0x8f7   :  { %v748_v13 = vmul.f32 %v1534_v45, %v1532_v57  ;;  %v747_v59 = vmul.f32 %v1534_v45, %v745_v58  ;;  %v1536_v61 = vpop.eup %1535 }
 0x8f8   :  { %v741_v62 = vadd.f32 1.0, %v1536_v61 }
 0x8f9   :  { %750 = vrot.lane.b32.xlu1 %v748_v13, %s1751_s21 }
 0x8fa   :  { %1537 = vrcp.f32 %v741_v62 }
 0x904   :  { %v1538_v14 = vpop.eup %1537 }
 0x96b   :  { %v751_v63 = vpop.permute.xlu1 %750 }
 0x96c   :  { %v753_v54 = vadd.f32 %v751_v63, %v747_v59 }
 0x96e   :  { %1539 = vtanh.f32 %v753_v54 }
 0x978   :  { %v1540_v1 = vpop.eup %1539 }
 0x979   :  { %v2034_v2 = vmul.f32 %v1540_v1, %v1538_v14 }
 0x97b   :  { %757 = vrot.lane.b32.xlu0 %v2034_v2, %s1751_s21 }
 0x9ed   :  { %v758_v3 = vpop.permute.xlu0 %757 }
 0x9ee   :  { %1272 = vmatmul.mubr.msk.f32.vlgmr.msra.gmra.mrb[8].mxu0 %vm220_vm4, %v758_v3 }
 0x9ef   :  { %1438 = vmatpush1.bf16.msra.mxu0 %v1885_v9  ;;  %1045 = vmatprep.mubr.f32.mxu0 %v1749_v0 }
 0x9f0   :  { %1440 = vmatprep.subr.bf16.mxu0 %v1887_v10 }
 0x9f3   :  { %1442 = vmatpush1.bf16.msra.mxu0 %v1891_v18 }
 0x9f4   :  { %1444 = vmatprep.subr.bf16.mxu0 %v1894_v23 }
 0x9f7   :  { %1446 = vmatpush1.bf16.msra.mxu0 %v1899_v33  ;;  %v854_v33 = vrot.slane %v753_v54, 6 }
 0x9f8   :  { %1448 = vmatprep.subr.bf16.mxu0 %v1905_v35 }
 0x9fb   :  { %1450 = vmatpush1.bf16.msra.mxu0 %v1912_v39 }
 0xac1   :  { %v827_v4 = vpop.f32.mrb[8].mxu0 }
 0xac2   :  { %v834_v6 = vrot.slane %v827_v4, 6  ;;  %v829_v7 = vpop.f32.mrb[9].mxu0 }
 0xac3   :  { %v835_v0 = vrot.slane %v829_v7, 6 }
 0xac4   :  { %v838_v8 = vadd.f32 %v834_v6, %v2025_v44 }
 0xac5   :  { %v839_v10 = vadd.f32 %v835_v0, %v2030_v51  ;;  %v1107_v0 = vld [vmem:[#allocation8 + $0x10] sm:$0xff] }
 0xac6   :  { %v1273_v9 = vmul.f32 -1.442695, %v838_v8  ;;  %v1105_v8 = vld [vmem:[#allocation8] sm:$0xff] }
 0xac7   :  { %v1274_v39 = vmul.f32 -1.442695, %v839_v10 }
 0xac8   :  { %1541 = vpow2.f32 %v1273_v9  ;;  %v1106_v9 = vld [vmem:[#allocation8 + $0x8] sm:$0xff] }
 0xac9   :  { %1543 = vtanh.f32 %v839_v10  ;;  %v1108_v10 = vld [vmem:[#allocation8 + $0x18] sm:$0xff] }
 0xad2   :  { %v1542_v11 = vpop.eup %1541 }
 0xad3   :  { %v843_v18 = vadd.f32 1.0, %v1542_v11  ;;  %v1544_v23 = vpop.eup %1543  ;;  %v1455_v11 = vpack.c.bf16 %v1108_v10, %v1107_v0 }
 0xad5   :  { %1545 = vrcp.f32 %v843_v18  ;;  %v1109_v18 = vld [vmem:[#allocation8 + $0x20] sm:$0xff] }
 0xad6   :  { %1547 = vpow2.f32 %v1274_v39 }
 0xadf   :  { %v1546_v15 = vpop.eup %1545 }
 0xae0   :  { %v857_v35 = vmul.f32 %v1546_v15, %v1544_v23  ;;  %v856_v16 = vmul.f32 %v1546_v15, %v854_v33  ;;  %v1548_v17 = vpop.eup %1547  ;;  %v1110_v23 = vld [vmem:[#allocation8 + $0x28] sm:$0xff]  ;;  %v1111_v33 = vld [vmem:[#allocation8 + $0x30] sm:$0xff]  ;;  %v1112_v15 = vld [vmem:[#allocation8 + $0x38] sm:$0xff] }
 0xae1   :  { %v850_v12 = vadd.f32 1.0, %v1548_v17 }
 0xae2   :  { %859 = vrot.lane.b32.xlu1 %v857_v35, %s1751_s21  ;;  %v1463_v35 = vpack.c.bf16 %v1112_v15, %v1111_v33 }
 0xae3   :  { %1549 = vrcp.f32 %v850_v12 }
 0xaed   :  { %v1550_v21 = vpop.eup %1549 }
 0xb54   :  { %v860_v19 = vpop.permute.xlu1 %859 }
 0xb55   :  { %v862_v20 = vadd.f32 %v860_v19, %v856_v16 }
 0xb57   :  { %1551 = vtanh.f32 %v862_v20  ;;  %v964_v37 = vrot.slane %v862_v20, 6 }
 0xb61   :  { %v1552_v22 = vpop.eup %1551 }
 0xb62   :  { %v864_v24 = vmul.f32 %v1552_v22, %v1550_v21 }
 0xb64   :  { %v866_v25 = vrot.slane %v864_v24, 2  ;;  %v1102_v56 = vsel %vm1096_vm5, %v2034_v2, %v864_v24 }
 0xb66   :  { %867 = vrot.lane.b32.xlu0 %v866_v25, %s1751_s21 }
 0xbd8   :  { %v868_v26 = vpop.permute.xlu0 %867 }
 0xbd9   :  { %1275 = vmatmul.mubr.msk.f32.vlgmr.msra.gmra.mrb[6].mxu1 %vm220_vm4, %v868_v26 }
 0xcac   :  { %v937_v27 = vpop.f32.mrb[6].mxu1 }
 0xcad   :  { %v944_v28 = vrot.slane %v937_v27, 4  ;;  %v939_v29 = vpop.f32.mrb[7].mxu1 }
 0xcae   :  { %v945_v32 = vrot.slane %v939_v29, 4 }
 0xcaf   :  { %v948_v30 = vadd.f32 %v944_v28, %v2025_v44 }
 0xcb0   :  { %v949_v5 = vadd.f32 %v945_v32, %v2030_v51 }
 0xcb1   :  { %v1276_v31 = vmul.f32 -1.442695, %v948_v30 }
 0xcb2   :  { %v1277_v41 = vmul.f32 -1.442695, %v949_v5 }
 0xcb3   :  { %1553 = vpow2.f32 %v1276_v31 }
 0xcb4   :  { %1555 = vtanh.f32 %v949_v5 }
 0xcbd   :  { %v1554_v34 = vpop.eup %1553 }
 0xcbe   :  { %v953_v48 = vadd.f32 1.0, %v1554_v34  ;;  %v1556_v36 = vpop.eup %1555 }
 0xcc0   :  { %1557 = vrcp.f32 %v953_v48 }
 0xcc1   :  { %1559 = vpow2.f32 %v1277_v41 }
 0xcca   :  { %v1558_v55 = vpop.eup %1557 }
 0xccb   :  { %v967_v38 = vmul.f32 %v1558_v55, %v1556_v36  ;;  %v966_v40 = vmul.f32 %v1558_v55, %v964_v37  ;;  %v1560_v43 = vpop.eup %1559 }
 0xccc   :  { %v960_v46 = vadd.f32 1.0, %v1560_v43 }
 0xccd   :  { %969 = vrot.lane.b32.xlu1 %v967_v38, %s1751_s21 }
 0xcce   :  { %1561 = vrcp.f32 %v960_v46 }
 0xcd8   :  { %v1562_v50 = vpop.eup %1561 }
 0xd3f   :  { %v970_v47 = vpop.permute.xlu1 %969 }
 0xd40   :  { %v972_v49 = vadd.f32 %v970_v47, %v966_v40 }
 0xd42   :  { %1563 = vtanh.f32 %v972_v49  ;;  %v1074_v3 = vrot.slane %v972_v49, 6 }
 0xd4c   :  { %v1564_v52 = vpop.eup %1563 }
 0xd4d   :  { %v974_v53 = vmul.f32 %v1564_v52, %v1562_v50 }
 0xd4f   :  { %v976_v57 = vrot.slane %v974_v53, 4  ;;  %v1103_v58 = vsel %vm1098_vm6, %v1102_v56, %v974_v53 }
 0xd51   :  { %977 = vrot.lane.b32.xlu0 %v976_v57, %s1751_s21 }
 0xd55   :  { %1122 = vrot.lane.b32.xlu0 %v2011_v42, %s1751_s21 }
 0xdc3   :  { %v978_v45 = vpop.permute.xlu0 %977 }
 0xdc4   :  { %1278 = vmatmul.mubr.msk.f32.vlgmr.msra.gmra.mrb[10].mxu0 %vm220_vm4, %v978_v45 }
 0xdc7   :  { %v1123_v13 = vpop.permute.xlu0 %1122 }
 0xdc8   :  { %1310 = vmatprep.mubr.msk.f32.mxu1 %vm220_vm4, %v1123_v13 }
 0xe97   :  { %v1047_v59 = vpop.f32.mrb[10].mxu0 }
 0xe98   :  { %v1054_v60 = vrot.slane %v1047_v59, 2  ;;  %v1049_v61 = vpop.f32.mrb[11].mxu0 }
 0xe99   :  { %v1055_v54 = vrot.slane %v1049_v61, 2 }
 0xe9a   :  { %v1058_v62 = vadd.f32 %v1054_v60, %v2025_v44  ;;  %v1451_v44 = vpack.c.bf16 %v1106_v9, %v1105_v8 }
 0xe9b   :  { %v1059_v14 = vadd.f32 %v1055_v54, %v2030_v51  ;;  %v1459_v51 = vpack.c.bf16 %v1110_v23, %v1109_v18 }
 0xe9c   :  { %v1279_v63 = vmul.f32 -1.442695, %v1058_v62  ;;  %1452 = vmatprep.subr.bf16.mxu1 %v1451_v44 }
 0xe9d   :  { %1454 = vmatpush3.bf16.msra.mxu1 %v1451_v44  ;;  %v1280_v16 = vmul.f32 -1.442695, %v1059_v14 }
 0xe9e   :  { %1565 = vpow2.f32 %v1279_v63  ;;  %1456 = vmatprep.subr.bf16.mxu1 %v1455_v11 }
 0xe9f   :  { %1567 = vtanh.f32 %v1059_v14 }
 0xea1   :  { %1458 = vmatpush3.bf16.msra.mxu1 %v1455_v11 }
 0xea2   :  { %1460 = vmatprep.subr.bf16.mxu1 %v1459_v51 }
 0xea5   :  { %1462 = vmatpush3.bf16.msra.mxu1 %v1459_v51 }
 0xea6   :  { %1464 = vmatprep.subr.bf16.mxu1 %v1463_v35 }
 0xea8   :  { %v1566_v1 = vpop.eup %1565 }
 0xea9   :  { %v1063_v2 = vadd.f32 1.0, %v1566_v1  ;;  %v1568_v42 = vpop.eup %1567  ;;  %1466 = vmatpush3.bf16.msra.mxu1 %v1463_v35 }
 0xeab   :  { %1569 = vrcp.f32 %v1063_v2 }
 0xeac   :  { %1571 = vpow2.f32 %v1280_v16 }
 0xeb5   :  { %v1570_v4 = vpop.eup %1569 }
 0xeb6   :  { %v1077_v6 = vmul.f32 %v1570_v4, %v1568_v42  ;;  %v1076_v7 = vmul.f32 %v1570_v4, %v1074_v3  ;;  %v1572_v39 = vpop.eup %1571 }
 0xeb7   :  { %v1070_v17 = vadd.f32 1.0, %v1572_v39 }
 0xeb8   :  { %1079 = vrot.lane.b32.xlu1 %v1077_v6, %s1751_s21 }
 0xeb9   :  { %1573 = vrcp.f32 %v1070_v17 }
 0xec3   :  { %v1574_v20 = vpop.eup %1573 }
 0xf2a   :  { %v1080_v12 = vpop.permute.xlu1 %1079 }
 0xf2b   :  { %v1082_v19 = vadd.f32 %v1080_v12, %v1076_v7 }
 0xf2d   :  { %1575 = vtanh.f32 %v1082_v19 }
 0xf37   :  { %v1576_v21 = vpop.eup %1575 }
 0xf38   :  { %v1084_v22 = vmul.f32 %v1576_v21, %v1574_v20 }
 0xf3a   :  { %1086 = vrot.lane.b32.xlu0 %v1084_v22, %s1751_s21  ;;  %v1104_v24 = vsel %vm1100_vm7, %v1103_v58, %v1084_v22 }
 0xf3b   :  { %1124 = vrot.lane.b32.xlu1 %v1104_v24, %s1751_s21 }
 0xf3f   :  { %1092 = vrot.lane.b32.xlu1 %v1082_v19, %s1751_s21 }
 0xfac   :  { %v1087_v25 = vpop.permute.xlu0 %1086 }
 0xfad   :  { %v1125_v26 = vpop.permute.xlu1 %1124  ;;  %1090 = vst.msk [vmem:[#allocation11 - $0x6] sm:$0xc0] %vm1089_vm8, %v1087_v25 }
 0xfae   :  { %1311 = vmatmul.mubr.msk.f32.vlgmr.msra.gmra.mrb[8].mxu1 %vm220_vm4, %v1125_v26 }
 0xfb1   :  { %v1093_v27 = vpop.permute.xlu1 %1092 }
 0xfb2   :  { %1095 = vst.msk [vmem:[#allocation13 - $0x6] sm:$0xc0] %vm1089_vm8, %v1093_v27 }
 0xfb3   :  { %1676 = shalt.err (!%p1673_p8)
}
 0xfb4   :  { %s1677_s0 = scalar_lea.hbm %s2122_s9, 32 }
 0xfb5   :  { %p1678_p9 = scmp.ne.s32.totalorder %s2122_s9, %s1677_s0  ;;  %p1681_p10 = scmp.lt.u32.totalorder %s1677_s0, %s2122_s9 }
 0xfb7   :  { %p1683_p11 = pnand %p1681_p10, %p1678_p9 }
 0xfb9   :  { %1686 = shalt.err (!%p1683_p11)
}
 0xfba   :  { %1228 = dma.vmem_to_hbm [thread:$0]  %s1226_s30, 32, %s2122_s9, [#allocation12]  }
 0xfbb   :  { %s1753_s20 = smov [#allocation13]  }
 0xfbc   :  { %s1235_s22 = sshll.u32 %s1753_s20, 4  ;;  %s1236_s22 = int_to_ptr.vmem [resolvable:$true] %s1235_s22 }
 0xfbd   :  { %s1687_s26 = scalar_lea.vmem %s1236_s22, 32  ;;  %p1692_p13 = scmp.lt.s32.totalorder %s1236_s22, %s1236_s22 }
 0xfbe   :  { %p1688_p12 = scmp.ne.s32.totalorder %s1236_s22, %s1687_s26  ;;  %p1693_p0 = scmp.lt.s32.totalorder %s1687_s26, %s1687_s26 }
 0xfc0   :  { %p1694_p1 = por %p1693_p0, %p1692_p13 }
 0xfc2   :  { %p1695_p2 = pnand %p1694_p1, %p1688_p12 }
 0xfc4   :  { %1698 = shalt.err (!%p1695_p2)
}
 0xfc5   :  { %s1699_s23 = scalar_lea.hbm %s2123_s10, 32 }
 0xfc6   :  { %p1700_p3 = scmp.ne.s32.totalorder %s2123_s10, %s1699_s23  ;;  %p1703_p4 = scmp.lt.u32.totalorder %s1699_s23, %s2123_s10 }
 0xfc8   :  { %p1705_p5 = pnand %p1703_p4, %p1700_p3 }
 0xfca   :  { %1708 = shalt.err (!%p1705_p5)
}
 0xfcb   :  { %1238 = dma.vmem_to_hbm [thread:$0]  %s1236_s22, 32, %s2123_s10, [#allocation12]   ;;  %v1281_v28 = vld [vmem:[%s2120_s7] ss:$0 sm:$0xff] }
 0xfcc   :  { %s1754_s5 = smov [#allocation10]  }
 0xfcd   :  { %s1212_s30 = sshll.u32 %s1754_s5, 4  ;;  %s1213_s30 = int_to_ptr.vmem [resolvable:$true] %s1212_s30 }
 0xfce   :  { %s1709_s11 = scalar_lea.vmem %s1213_s30, 256  ;;  %p1714_p7 = scmp.lt.s32.totalorder %s1213_s30, %s1213_s30 }
 0xfcf   :  { %p1710_p6 = scmp.ne.s32.totalorder %s1213_s30, %s1709_s11  ;;  %p1715_p8 = scmp.lt.s32.totalorder %s1709_s11, %s1709_s11 }
 0xfd1   :  { %p1716_p9 = por %p1715_p8, %p1714_p7 }
 0xfd3   :  { %p1717_p10 = pnand %p1716_p9, %p1710_p6 }
0x1081   :  { %v1312_v29 = vpop.f32.mrb[8].mxu1 }
0x1082   :  { %v1202_v30 = vadd.f32 %v1312_v29, %v1281_v28  ;;  %v1196_v31 = vpop.f32.mrb[9].mxu1 }
0x1083   :  { %v1197_v32 = vadd.f32 %v1281_v28, %v1196_v31 }
0x1084   :  { %1206 = vst [vmem:[#allocation10 + $0x8] sm:$0xff] %v1202_v30 }
0x1085   :  { %1205 = vst [vmem:[#allocation10] sm:$0xff] %v1197_v32 }
0x1086   :  { %1720 = shalt.err (!%p1717_p10)
}
0x1087   :  { %s1721_s7 = scalar_lea.hbm %s2121_s8, 256 }
0x1088   :  { %p1722_p11 = scmp.ne.s32.totalorder %s2121_s8, %s1721_s7  ;;  %p1725_p12 = scmp.lt.u32.totalorder %s1721_s7, %s2121_s8 }
0x108a   :  { %p1727_p13 = pnand %p1725_p12, %p1722_p11 }
0x108c   :  { %1730 = shalt.err (!%p1727_p13)
}
0x108d   :  { %1218 = dma.vmem_to_hbm [thread:$0]  %s1213_s30, 256, %s2121_s8, [#allocation4], %s1745_s3, %s1745_s3, %s1746_s14  }
0x108e   :  { %1737 = dma.done.wait [#allocation4], 256  }
0x108f   :  { %1738 = vsyncadd [#allocation4], 4294967040 }
0x1090   :  { %1739 = dma.done.wait [#allocation12], 64  }
0x1091   :  { %1740 = vsyncadd [#allocation12], 4294967232 }
0x1092   :  { %1248 = vsyncpa [#allocation3], 1 }
0x1093   :  { %1249 = vsyncpa [#allocation6], 1 }
0x1094   :  { %1250 = vsyncpa [#allocation9], 1 }
0x1095   :  { %1251 = vsyncpa [#allocation4], 1 }
0x1096   :  { %1252 = vsyncpa [#allocation12], 1 }

</bundles_post_ra>
